<compile_context>
chip_gen: v7x
topology: tpu7x:2x2x1
jax: 0.10.0
libtpu: 0.0.40
codegen_flags: <defaults>
</compile_context>

<pallas_src>
import functools
import math

import jax
import jax.numpy as jnp
from jax.experimental import pallas as pl
from jax.experimental.pallas import tpu as pltpu

LEAKY_SLOPE = 0.01       # nn.LeakyReLU() default negative_slope
LANE = 128
SUBLANE = 8
MIB = 1024 * 1024


def _cdiv(a, b):
    return -(-a // b)


def _round_up(x, m):
    return ((x + m - 1) // m) * m


def _maybe_pad(x, pads):
    if any(lo or hi for lo, hi in pads):
        return jnp.pad(x, pads)
    return x


def _chip_info():
    """Returns (vmem_capacity_bytes, device_kind lowercase), with conservative
    fallbacks if the hardware query is unavailable."""
    kind = ''
    try:
        kind = jax.devices()[0].device_kind.lower()
    except Exception:
        pass
    vmem_cap = None
    try:
        vmem_cap = int(pltpu.get_tpu_info().vmem_capacity_bytes)
    except Exception:
        vmem_cap = None
    if not vmem_cap:
        vmem_cap = 64 * MIB          # unknown chip: assume the smallest (v7x)
    return vmem_cap, kind


def _pick_batch_tile(B, cap):
    """Batch ("parallel") tile.  For B > 8 always produce >= 2 tiles so both
    v7x TensorCores get work; tiles are sublane multiples when B is split."""
    if B <= SUBLANE:
        return B                                   # block == full dim is legal
    bt = _round_up(_cdiv(B, 2), SUBLANE)
    return max(SUBLANE, min(bt, _round_up(cap, SUBLANE)))


# --------------------------------------------------------------------------- #
# Kernels
# --------------------------------------------------------------------------- #
def _cls_kernel(compute_dtype, x_ref, w1_ref, b1_ref, w2_ref, b2_ref, out_ref):
    """CLS. grid = (batch tiles,).  x_ref: (b_tile, E) -- the CLS rows only."""
    x = x_ref[...].astype(compute_dtype)
    h = jnp.dot(x, w1_ref[...], preferred_element_type=jnp.float32) + b1_ref[...]
    h = jnp.where(h > 0, h, LEAKY_SLOPE * h)
    # Dropout: module evaluated in eval() mode -> identity.
    out = jnp.dot(h.astype(compute_dtype), w2_ref[...],
                  preferred_element_type=jnp.float32) + b2_ref[...]
    out_ref[...] = out.astype(out_ref.dtype)


def _pooled_kernel(seq_len, s_tile, inv_len, compute_dtype, mask_seq,
                   enc_ref, w1_ref, b1_ref, w2_ref, b2_ref, out_ref, pool_acc):
    """MEAN / SUM.  grid = (batch tiles, seq tiles).
    enc_ref: (b_tile, s_tile, E); pool_acc: (b_tile, E) f32 scratch."""
    s = pl.program_id(1)

    @pl.when(s == 0)
    def _init():
        pool_acc[...] = jnp.zeros_like(pool_acc)

    x = enc_ref[...]
    if mask_seq:                       # static: only emitted when S % s_tile != 0
        row = jax.lax.broadcasted_iota(jnp.int32, (s_tile, 1), 0) + s * s_tile
        x = jnp.where((row < seq_len)[None, :, :], x, jnp.zeros_like(x))
    # TODO(synk): if the sublane reduction ever binds the VALU slot for very
    # long S, implement it as ones(1, s_tile) @ x on the otherwise-idle MXU.
    pool_acc[...] += jnp.sum(x, axis=1, dtype=jnp.float32)

    @pl.when(s == pl.num_programs(1) - 1)
    def _finalize():
        pooled = pool_acc[...]
        if inv_len != 1.0:                        # MEAN: scale by precomputed 1/S
            pooled = pooled * inv_len
        h = jnp.dot(pooled.astype(compute_dtype), w1_ref[...],
                    preferred_element_type=jnp.float32) + b1_ref[...]
        h = jnp.where(h > 0, h, LEAKY_SLOPE * h)
        # Dropout: eval() mode -> identity.
        # TODO(synk): training-mode dropout would use pltpu.prng_seed / prng_random_bits.
        out = jnp.dot(h.astype(compute_dtype), w2_ref[...],
                      preferred_element_type=jnp.float32) + b2_ref[...]
        out_ref[...] = out.astype(out_ref.dtype)


def _flatten_kernel(k_total, k_tile, compute_dtype, mask_k,
                    x_ref, w1_ref, b1_ref, w2_ref, b2_ref, out_ref, h_acc):
    """FLATTEN.  grid = (batch tiles, K tiles), K = S*E.
    x_ref: (b_tile, k_tile); h_acc: (b_tile, mlp_pad) f32 scratch."""
    k = pl.program_id(1)

    @pl.when(k == 0)
    def _init():
        h_acc[...] = jnp.zeros_like(h_acc)

    x = x_ref[...]
    if mask_k:                          # static: only emitted when K % k_tile != 0
        col = jax.lax.broadcasted_iota(jnp.int32, (1, k_tile), 1) + k * k_tile
        x = jnp.where(col < k_total, x, jnp.zeros_like(x))
    h_acc[...] += jnp.dot(x.astype(compute_dtype), w1_ref[...],
                          preferred_element_type=jnp.float32)

    @pl.when(k == pl.num_programs(1) - 1)
    def _finalize():
        h = h_acc[...] + b1_ref[...]
        h = jnp.where(h > 0, h, LEAKY_SLOPE * h)
        # Dropout: eval() mode -> identity.
        out = jnp.dot(h.astype(compute_dtype), w2_ref[...],
                      preferred_element_type=jnp.float32) + b2_ref[...]
        out_ref[...] = out.astype(out_ref.dtype)


# --------------------------------------------------------------------------- #
# Wrapper
# --------------------------------------------------------------------------- #
def single_classifier_forward(encoded, params, pooling_type, *,
                              compute_dtype=jnp.bfloat16,
                              b_tile_cap=None, s_tile_cap=1024,
                              k_tile_cap=4096, allow_resident_w1=True):
    """encoded: (B, S, E). Returns (B, num_class). eval()-mode forward."""
    w1, b1, w2, b2 = params
    B, S, E = encoded.shape
    in1, mlp_dim = w1.shape
    num_class = w2.shape[1]
    act_dtype = encoded.dtype
    dsize = jnp.dtype(act_dtype).itemsize
    wsize = jnp.dtype(compute_dtype).itemsize

    # ---- per-chip VMEM budget ---------------------------------------------
    vmem_cap, kind = _chip_info()
    if vmem_cap <= 64 * MIB:            # v7x (or unknown): leave HW headroom
        vmem_limit = min(int(vmem_cap * 0.80), 56 * MIB)
    else:                               # v5e / v6e: 128 MiB physical
        vmem_limit = min(int(vmem_cap * 0.78), 100 * MIB)
    budget = int(vmem_limit * 0.85)     # what the tiling math may consume

    if b_tile_cap is None:
        b_tile_cap = 128 if (pooling_type != 'FLATTEN' or 'v5' in kind) else 256

    # ---- weights / biases: lane-pad + cast once in HBM (cheap) -------------
    mlp_pad = _round_up(mlp_dim, LANE)
    nc_pad = _round_up(num_class, LANE)
    w2p = _maybe_pad(w2, ((0, mlp_pad - mlp_dim),
                          (0, nc_pad - num_class))).astype(compute_dtype)
    b1p = _maybe_pad(b1.reshape(1, -1),
                     ((0, 0), (0, mlp_pad - mlp_dim))).astype(jnp.float32)
    b2p = _maybe_pad(b2.reshape(1, -1),
                     ((0, 0), (0, nc_pad - num_class))).astype(jnp.float32)
    # TODO(synk): pipeline_mode=pl.Buffered(1) on the constant-index weight/bias
    # specs would halve their (small) double-buffered VMEM footprint.

    b_tile = _pick_batch_tile(B, b_tile_cap)
    fixed_bytes = 2 * w2p.size * wsize + 2 * (b1p.size + b2p.size) * 4

    def _headroom(bt):                  # budget left for the streaming input
        return budget - fixed_bytes - 2 * bt * nc_pad * dsize

    if pooling_type == 'CLS':
        w1p = _maybe_pad(w1, ((0, 0), (0, mlp_pad - mlp_dim))).astype(compute_dtype)
        x = encoded[:, 0, :]            # (B, E): only the CLS row is ever read
        n_b = _cdiv(B, b_tile)
        grid = (n_b,)
        in_specs = [
            pl.BlockSpec((b_tile, E), lambda i: (i, 0)),
            pl.BlockSpec(w1p.shape, lambda i: (0, 0)),
            pl.BlockSpec(b1p.shape, lambda i: (0, 0)),
            pl.BlockSpec(w2p.shape, lambda i: (0, 0)),
            pl.BlockSpec(b2p.shape, lambda i: (0, 0)),
        ]
        out_specs = pl.BlockSpec((b_tile, nc_pad), lambda i: (i, 0))
        scratch = []
        kernel = functools.partial(_cls_kernel, compute_dtype)
        operands = (x, w1p, b1p, w2p, b2p)
        semantics = ("parallel",)
        flops = 2 * B * (E * mlp_dim + mlp_dim * num_class)
        bytes_accessed = (B * E * dsize + (w1p.size + w2p.size) * wsize
                          + (b1p.size + b2p.size) * 4 + B * nc_pad * dsize)

    elif pooling_type in ('MEAN', 'SUM'):
        w1p = _maybe_pad(w1, ((0, 0), (0, mlp_pad - mlp_dim))).astype(compute_dtype)
        w1_bytes = 2 * w1p.size * wsize
        # Shrink the batch tile until at least an 8-row seq tile fits the budget.
        while b_tile > SUBLANE:
            avail = _headroom(b_tile) - w1_bytes - b_tile * E * 4
            if avail >= 2 * b_tile * SUBLANE * E * dsize:
                break
            b_tile = max(SUBLANE, (b_tile // 2 // SUBLANE) * SUBLANE)
        avail = _headroom(b_tile) - w1_bytes - b_tile * E * 4
        s_fit = max(SUBLANE, avail // max(1, 2 * b_tile * E * dsize))
        s_cap = min(s_tile_cap, int(s_fit))
        if S <= s_cap:
            s_tile, mask_seq = S, False
        else:
            s_tile = max(SUBLANE, (s_cap // SUBLANE) * SUBLANE)
            mask_seq = (S % s_tile) != 0
        n_b, n_s = _cdiv(B, b_tile), _cdiv(S, s_tile)
        grid = (n_b, n_s)
        in_specs = [
            pl.BlockSpec((b_tile, s_tile, E), lambda i, s: (i, s, 0)),
            pl.BlockSpec(w1p.shape, lambda i, s: (0, 0)),
            pl.BlockSpec(b1p.shape, lambda i, s: (0, 0)),
            pl.BlockSpec(w2p.shape, lambda i, s: (0, 0)),
            pl.BlockSpec(b2p.shape, lambda i, s: (0, 0)),
        ]
        out_specs = pl.BlockSpec((b_tile, nc_pad), lambda i, s: (i, 0))
        scratch = [pltpu.VMEM((b_tile, E), jnp.float32)]
        inv_len = (1.0 / S) if pooling_type == 'MEAN' else 1.0
        kernel = functools.partial(_pooled_kernel, S, s_tile, inv_len,
                                   compute_dtype, mask_seq)
        operands = (encoded, w1p, b1p, w2p, b2p)
        semantics = ("parallel", "arbitrary")
        flops = B * S * E + 2 * B * (E * mlp_dim + mlp_dim * num_class)
        bytes_accessed = (B * S * E * dsize + (w1p.size + w2p.size) * wsize
                          + (b1p.size + b2p.size) * 4 + B * nc_pad * dsize)

    elif pooling_type == 'FLATTEN':
        K = S * E
        assert in1 == K, 'FLATTEN expects linear1 fan-in == max_seq_len*encoder_dim'
        x = encoded.reshape(B, K)       # contiguous view; no extra HBM copy
        w1c = _maybe_pad(w1, ((0, 0), (0, mlp_pad - mlp_dim))).astype(compute_dtype)
        resident_need = 2 * K * mlp_pad * wsize + 2 * b_tile * K * dsize
        can_reside = allow_resident_w1 and (
            resident_need <= _headroom(b_tile) - b_tile * mlp_pad * 4)
        if can_reside:
            # w1 stays VMEM-resident across all batch tiles (constant index map).
            k_tile, mask_k, w1p = K, False, w1c
        else:
            # Tile K; shrink b_tile until at least a 128-wide K tile fits.
            while b_tile > SUBLANE:
                avail = _headroom(b_tile) - b_tile * mlp_pad * 4
                if avail >= 2 * LANE * (b_tile * dsize + mlp_pad * wsize):
                    break
                b_tile = max(SUBLANE, (b_tile // 2 // SUBLANE) * SUBLANE)
            avail = _headroom(b_tile) - b_tile * mlp_pad * 4
            per_k = 2 * (b_tile * dsize + mlp_pad * wsize)
            k_fit = max(LANE, (avail // per_k) // LANE * LANE)
            k_tile = min(k_fit, k_tile_cap, _round_up(K, LANE))
            mask_k = (K % k_tile) != 0
            # Zero-pad w1 rows so boundary K blocks never read out of bounds
            # (the ragged x tail is masked in-kernel).
            w1p = _maybe_pad(w1c, ((0, _cdiv(K, k_tile) * k_tile - K), (0, 0)))
        n_b, n_k = _cdiv(B, b_tile), _cdiv(K, k_tile)
        grid = (n_b, n_k)
        in_specs = [
            pl.BlockSpec((b_tile, k_tile), lambda i, k: (i, k)),
            pl.BlockSpec((k_tile, mlp_pad), lambda i, k: (k, 0)),
            pl.BlockSpec(b1p.shape, lambda i, k: (0, 0)),
            pl.BlockSpec(w2p.shape, lambda i, k: (0, 0)),
            pl.BlockSpec(b2p.shape, lambda i, k: (0, 0)),
        ]
        out_specs = pl.BlockSpec((b_tile, nc_pad), lambda i, k: (i, 0))
        scratch = [pltpu.VMEM((b_tile, mlp_pad), jnp.float32)]
        kernel = functools.partial(_flatten_kernel, K, k_tile, compute_dtype, mask_k)
        operands = (x, w1p, b1p, w2p, b2p)
        semantics = ("parallel", "arbitrary")
        flops = 2 * B * (K * mlp_dim + mlp_dim * num_class)
        w1_streams = n_b if n_k > 1 else 1   # re-streamed per batch tile when K is tiled
        bytes_accessed = (B * K * dsize + w1p.size * wsize * w1_streams
                          + w2p.size * wsize + (b1p.size + b2p.size) * 4
                          + B * nc_pad * dsize)
    else:
        raise NotImplementedError('Pooling type is not supported.')

    out_padded = pl.pallas_call(
        kernel,
        out_shape=jax.ShapeDtypeStruct((B, nc_pad), act_dtype),
        grid_spec=pltpu.PrefetchScalarGridSpec(
            num_scalar_prefetch=0,
            grid=grid,
            in_specs=in_specs,
            out_specs=out_specs,
            scratch_shapes=scratch,
        ),
        compiler_params=pltpu.CompilerParams(
            dimension_semantics=semantics,
            vmem_limit_bytes=int(vmem_limit),
        ),
        cost_estimate=pl.CostEstimate(flops=int(flops), transcendentals=0,
                                      bytes_accessed=int(bytes_accessed)),
    )(*operands)
    return out_padded[:, :num_class]


# --------------------------------------------------------------------------- #
# Parameter init (mirrors SingleClassifier.reset_parameters) + reference
# --------------------------------------------------------------------------- #
def init_params(key, pooling_type, max_seq_len, encoder_dim, mlp_dim, num_class,
                dtype=jnp.float32):
    in1 = max_seq_len * encoder_dim if pooling_type == 'FLATTEN' else encoder_dim
    k1, k2 = jax.random.split(key)
    # kaiming_normal_(nonlinearity='leaky_relu'): std = gain / sqrt(fan_in)
    gain1 = math.sqrt(2.0 / (1.0 + LEAKY_SLOPE ** 2))
    w1 = (gain1 / math.sqrt(in1)) * jax.random.normal(k1, (in1, mlp_dim), dtype)
    # xavier_normal_(gain=1.0): std = sqrt(2 / (fan_in + fan_out))
    std2 = math.sqrt(2.0 / (mlp_dim + num_class))
    w2 = std2 * jax.random.normal(k2, (mlp_dim, num_class), dtype)
    b1 = jnp.zeros((1, mlp_dim), dtype)
    b2 = jnp.zeros((1, num_class), dtype)
    return w1, b1, w2, b2


def _reference_forward(encoded, params, pooling_type):
    w1, b1, w2, b2 = params
    if pooling_type == 'CLS':
        pooled = encoded[:, 0, :]
    elif pooling_type == 'MEAN':
        pooled = encoded.mean(axis=1)
    elif pooling_type == 'SUM':
        pooled = encoded.sum(axis=1)
    else:
        pooled = encoded.reshape(encoded.shape[0], -1)
    hi = jax.lax.Precision.HIGHEST
    h = jnp.dot(pooled, w1, precision=hi) + b1
    h = jnp.where(h > 0, h, LEAKY_SLOPE * h)
    return jnp.dot(h, w2, precision=hi) + b2


# --------------------------------------------------------------------------- #
if __name__ == "__main__":
    ok = True
    modes = ('CLS', 'MEAN', 'SUM', 'FLATTEN')

    def run_case(B, S, E, MLP, NC, mode, tol, **kwargs):
        global ok
        key = jax.random.PRNGKey(0)
        k_x, k_p = jax.random.split(key)
        encoded = jax.random.normal(k_x, (B, S, E), jnp.float32)
        params = init_params(k_p, mode, S, E, MLP, NC)
        out = jax.block_until_ready(
            single_classifier_forward(encoded, params, mode, **kwargs))
        ref = _reference_forward(encoded, params, mode)
        if out.shape != (B, NC):
            ok = False
            print(f"bad output shape for mode={mode}: {out.shape} != {(B, NC)}")
            return
        err = float(jnp.max(jnp.abs(out - ref)))
        scale = float(jnp.max(jnp.abs(ref))) + 1.0
        if not (err <= tol * scale):
            ok = False
            print(f"mismatch: mode={mode} B={B} S={S} E={E} {kwargs} "
                  f"max_abs_err={err:.3e} (allowed {tol * scale:.3e})")

    # f32 compute parity on small spec-like shapes (single-tile paths).
    for mode in modes:
        run_case(2, 8, 32, 32, 4, mode, 1e-2, compute_dtype=jnp.float32)

    # Ragged batch / seq tiling paths (B=20 -> two 16-row batch tiles,
    # S=272 with 64-row seq tiles -> masked ragged tail), f32 compute.
    for mode in modes:
        run_case(20, 272, 64, 96, 10, mode, 1e-2,
                 compute_dtype=jnp.float32, s_tile_cap=64)
    # Force the K-tiled (non-resident w1) FLATTEN path with a ragged last K block.
    run_case(20, 272, 64, 96, 10, 'FLATTEN', 1e-2,
             compute_dtype=jnp.float32, allow_resident_w1=False, k_tile_cap=4096)

    # Default bf16 compute path (weights cast once in HBM, f32 accumulation).
    for mode in modes:
        run_case(2, 8, 32, 32, 4, mode, 5e-2)

    if ok:
        print("KERNEL_OK")
</pallas_src>

<mosaic_0001>
module attributes {stable_mosaic.version = 11 : i64} {
  func.func @_cls_kernel(%arg0: i32, %arg1: memref<2x32xf32, #tpu.memory_space<vmem>>, %arg2: memref<32x128xf32, #tpu.memory_space<vmem>>, %arg3: memref<1x128xf32, #tpu.memory_space<vmem>>, %arg4: memref<128x128xf32, #tpu.memory_space<vmem>>, %arg5: memref<1x128xf32, #tpu.memory_space<vmem>>, %arg6: memref<2x128xf32, #tpu.memory_space<vmem>>) attributes {dimension_semantics = [#tpu.dimension_semantics<parallel>], iteration_bounds = array<i64: 1>, scalar_prefetch = 0 : i64, scratch_operands = 0 : i64, tpu.core_type = #tpu.core_type<tc>, window_params = [{transform_indices = @transform_0, window_bounds = array<i64: 2, 32>}, {pipeline_mode = #tpu.pipeline_mode<synchronous>, transform_indices = @transform_1, window_bounds = array<i64: 32, 128>}, {pipeline_mode = #tpu.pipeline_mode<synchronous>, transform_indices = @transform_2, window_bounds = array<i64: 1, 128>}, {pipeline_mode = #tpu.pipeline_mode<synchronous>, transform_indices = @transform_3, window_bounds = array<i64: 128, 128>}, {pipeline_mode = #tpu.pipeline_mode<synchronous>, transform_indices = @transform_4, window_bounds = array<i64: 1, 128>}, {transform_indices = @transform_5, window_bounds = array<i64: 2, 128>}]} {
    %c0 = arith.constant 0 : index
    %c0_0 = arith.constant 0 : index
    %0 = vector.load %arg1[%c0, %c0_0] : memref<2x32xf32, #tpu.memory_space<vmem>>, vector<2x32xf32>
    %c0_1 = arith.constant 0 : index
    %c0_2 = arith.constant 0 : index
    %1 = vector.load %arg2[%c0_1, %c0_2] : memref<32x128xf32, #tpu.memory_space<vmem>>, vector<32x128xf32>
    %cst = arith.constant dense<0.000000e+00> : vector<2x128xf32>
    %2 = tpu.matmul %0, %1, %cst {dimension_numbers = #tpu.dot_dimension_numbers<[1], [0], [0], [1], [0, 0, 1, 1], [], []>} : vector<2x32xf32>, vector<32x128xf32>, vector<2x128xf32> -> vector<2x128xf32>
    %c0_3 = arith.constant 0 : index
    %c0_4 = arith.constant 0 : index
    %3 = vector.load %arg3[%c0_3, %c0_4] : memref<1x128xf32, #tpu.memory_space<vmem>>, vector<1x128xf32>
    %4 = vector.broadcast %3 : vector<1x128xf32> to vector<2x128xf32>
    %5 = arith.addf %2, %4 : vector<2x128xf32>
    %cst_5 = arith.constant 0.000000e+00 : f32
    %6 = vector.broadcast %cst_5 : f32 to vector<2x128xf32>
    %7 = arith.cmpf ogt, %5, %6 : vector<2x128xf32>
    %cst_6 = arith.constant 0.00999999977 : f32
    %8 = vector.broadcast %cst_6 : f32 to vector<2x128xf32>
    %9 = arith.mulf %8, %5 : vector<2x128xf32>
    %10 = arith.select %7, %5, %9 : vector<2x128xi1>, vector<2x128xf32>
    %c0_7 = arith.constant 0 : index
    %c0_8 = arith.constant 0 : index
    %11 = vector.load %arg4[%c0_7, %c0_8] : memref<128x128xf32, #tpu.memory_space<vmem>>, vector<128x128xf32>
    %cst_9 = arith.constant dense<0.000000e+00> : vector<2x128xf32>
    %12 = tpu.matmul %10, %11, %cst_9 {dimension_numbers = #tpu.dot_dimension_numbers<[1], [0], [0], [1], [0, 0, 1, 1], [], []>} : vector<2x128xf32>, vector<128x128xf32>, vector<2x128xf32> -> vector<2x128xf32>
    %c0_10 = arith.constant 0 : index
    %c0_11 = arith.constant 0 : index
    %13 = vector.load %arg5[%c0_10, %c0_11] : memref<1x128xf32, #tpu.memory_space<vmem>>, vector<1x128xf32>
    %14 = vector.broadcast %13 : vector<1x128xf32> to vector<2x128xf32>
    %15 = arith.addf %12, %14 : vector<2x128xf32>
    %c0_12 = arith.constant 0 : index
    %c0_13 = arith.constant 0 : index
    %16 = vector.load %arg6[%c0_12, %c0_13] : memref<2x128xf32, #tpu.memory_space<vmem>>, vector<2x128xf32>
    tpu.vector_store %arg6[%c0_12, %c0_13], %15 {strides = array<i32>} : memref<2x128xf32, #tpu.memory_space<vmem>>, vector<2x128xf32>,
    return
  }
  func.func @transform_0(%arg0: i32) -> (i32, i32) {
    %c0_i32 = arith.constant 0 : i32
    %c0_i32_0 = arith.constant 0 : i32
    return %arg0, %c0_i32 : i32, i32
  }
  func.func @transform_1(%arg0: i32) -> (i32, i32) {
    %c0_i32 = arith.constant 0 : i32
    %c0_i32_0 = arith.constant 0 : i32
    %c0_i32_1 = arith.constant 0 : i32
    return %c0_i32, %c0_i32_0 : i32, i32
  }
  func.func @transform_2(%arg0: i32) -> (i32, i32) {
    %c0_i32 = arith.constant 0 : i32
    %c0_i32_0 = arith.constant 0 : i32
    %c0_i32_1 = arith.constant 0 : i32
    return %c0_i32, %c0_i32_0 : i32, i32
  }
  func.func @transform_3(%arg0: i32) -> (i32, i32) {
    %c0_i32 = arith.constant 0 : i32
    %c0_i32_0 = arith.constant 0 : i32
    %c0_i32_1 = arith.constant 0 : i32
    return %c0_i32, %c0_i32_0 : i32, i32
  }
  func.func @transform_4(%arg0: i32) -> (i32, i32) {
    %c0_i32 = arith.constant 0 : i32
    %c0_i32_0 = arith.constant 0 : i32
    %c0_i32_1 = arith.constant 0 : i32
    return %c0_i32, %c0_i32_0 : i32, i32
  }
  func.func @transform_5(%arg0: i32) -> (i32, i32) {
    %c0_i32 = arith.constant 0 : i32
    %c0_i32_0 = arith.constant 0 : i32
    return %arg0, %c0_i32 : i32, i32
  }
}

</mosaic_0001>

<bundles_post_ra>
// kernel: tpu_custom_call.1
= control target key start
LH: loop header
LB: loop body
LE: loop exit
PB: predicated region body
PF: predicated region fallthrough
CT: control target
= control target key end

     0   :  { %10 = vsyncpa [#allocation3], 0  ;;  %s562_s0 = inlined_call_operand.hbm [shape: f32[2,32], index: 0, kind: input, shape index: {}]   ;;  %s563_s1 = inlined_call_operand.hbm [shape: f32[32,128], index: 1, kind: input, shape index: {}]   ;;  %s564_s2 = inlined_call_operand.vmem [shape: f32[1,128], index: 2, kind: input, shape index: {}]   ;;  %s565_s3 = inlined_call_operand.hbm [shape: f32[128,128], index: 3, kind: input, shape index: {}]   ;;  %s566_s4 = inlined_call_operand.vmem [shape: f32[1,128], index: 4, kind: input, shape index: {}]   ;;  %s567_s5 = inlined_call_operand.hbm [shape: f32[2,128], index: 5, kind: output, shape index: {}]  }
   0x1   :  { %11 = vsyncpa [#allocation6], 0 }
   0x2   :  { %12 = vsyncpa [#allocation4], 0  ;;  %s463_s18 = smov [#allocation5]   ;;  %s369_s22 = scalar_lea.hbm %s563_s1, 512 }
   0x3   :  { %s28_s19 = sshll.u32 %s463_s18, 4  ;;  %p370_p0 = scmp.ne.s32.totalorder %s563_s1, %s369_s22  ;;  %s29_s19 = int_to_ptr.vmem [resolvable:$true] %s28_s19 }
   0x4   :  { %p373_p1 = scmp.lt.u32.totalorder %s369_s22, %s563_s1 }
   0x6   :  { %p375_p2 = pnand %p373_p1, %p370_p0 }
   0x8   :  { %378 = shalt.err (!%p375_p2)
}
   0x9   :  { %s379_s27 = scalar_lea.vmem %s29_s19, 512  ;;  %p384_p4 = scmp.lt.s32.totalorder %s29_s19, %s29_s19 }
   0xa   :  { %p380_p3 = scmp.ne.s32.totalorder %s29_s19, %s379_s27  ;;  %p385_p5 = scmp.lt.s32.totalorder %s379_s27, %s379_s27 }
   0xc   :  { %p386_p6 = por %p385_p5, %p384_p4 }
   0xe   :  { %p387_p7 = pnand %p386_p6, %p380_p3 }
  0x10   :  { %390 = shalt.err (!%p387_p7)
}
  0x11   :  { %s464_s28 = smov 128   ;;  %s465_s29 = smov 8  }
  0x12   :  { %34 = dma.hbm_to_vmem [thread:$0]  %s563_s1, 512, %s29_s19, [#allocation6], %s464_s28, %s464_s28, %s465_s29  }
  0x13   :  { %s466_s7 = smov [#allocation2]   ;;  %s467_s9 = smov [#allocation7]  }
  0x14   :  { %s19_s8 = sshll.u32 %s466_s7, 4  ;;  %s42_s10 = sshll.u32 %s467_s9, 4  ;;  %s20_s8 = int_to_ptr.vmem [resolvable:$true] %s19_s8  ;;  %s43_s10 = int_to_ptr.vmem [resolvable:$true] %s42_s10 }
  0x15   :  { %s391_s13 = scalar_lea.hbm %s562_s0, 32 }
  0x16   :  { %p392_p8 = scmp.ne.s32.totalorder %s562_s0, %s391_s13  ;;  %p395_p9 = scmp.lt.u32.totalorder %s391_s13, %s562_s0 }
  0x18   :  { %p397_p10 = pnand %p395_p9, %p392_p8 }
  0x1a   :  { %400 = shalt.err (!%p397_p10)
}
  0x1b   :  { %s401_s1 = scalar_lea.vmem %s20_s8, 32  ;;  %p406_p12 = scmp.lt.s32.totalorder %s20_s8, %s20_s8 }
  0x1c   :  { %p402_p11 = scmp.ne.s32.totalorder %s20_s8, %s401_s1  ;;  %p407_p13 = scmp.lt.s32.totalorder %s401_s1, %s401_s1 }
  0x1e   :  { %p408_p0 = por %p407_p13, %p406_p12 }
  0x20   :  { %p409_p1 = pnand %p408_p0, %p402_p11 }
  0x22   :  { %412 = shalt.err (!%p409_p1)
}
  0x23   :  { %22 = dma.hbm_to_vmem [thread:$0]  %s562_s0, 32, %s20_s8, [#allocation3]  }
  0x24   :  { %s413_s22 = scalar_lea.hbm %s565_s3, 2048 }
  0x25   :  { %p414_p2 = scmp.ne.s32.totalorder %s565_s3, %s413_s22  ;;  %p417_p3 = scmp.lt.u32.totalorder %s413_s22, %s565_s3 }
  0x27   :  { %p419_p4 = pnand %p417_p3, %p414_p2 }
  0x29   :  { %422 = shalt.err (!%p419_p4)
}
  0x2a   :  { %s423_s27 = scalar_lea.vmem %s43_s10, 2048  ;;  %p428_p6 = scmp.lt.s32.totalorder %s43_s10, %s43_s10 }
  0x2b   :  { %p424_p5 = scmp.ne.s32.totalorder %s43_s10, %s423_s27  ;;  %p429_p7 = scmp.lt.s32.totalorder %s423_s27, %s423_s27 }
  0x2d   :  { %p430_p8 = por %p429_p7, %p428_p6 }
  0x2f   :  { %p431_p9 = pnand %p430_p8, %p424_p5 }
  0x31   :  { %434 = shalt.err (!%p431_p9)
}
  0x32   :  { %48 = dma.hbm_to_vmem [thread:$0]  %s565_s3, 2048, %s43_s10, [#allocation6], %s464_s28, %s464_s28, %s465_s29  }
  0x33   :  { %457 = dma.done.wait [#allocation3], 32  }
  0x34   :  { %458 = vsyncadd [#allocation3], 4294967264 }
  0x35   :  { %459 = dma.done.wait [#allocation6], 2560  }
  0x36   :  { %460 = vsyncadd [#allocation6], 4294964736  ;;  %v468_v0 = vmov 0.0|0.0   ;;  %vm469_vm0 = vmmov 0   ;;  %v470_v1 = vmov 0.0   ;;  %v61_v2 = vld [vmem:[#allocation5] sm:$0xff] }
  0x37   :  { %330 = vmatprep.subr.bf16.mxu0 %v468_v0  ;;  %292 = vmatprep.mubr.msk.f32.mxu0 %vm469_vm0, %v470_v1  ;;  %v62_v3 = vld [vmem:[#allocation5 + $0x8] sm:$0xff]  ;;  %v63_v4 = vld [vmem:[#allocation5 + $0x10] sm:$0xff]  ;;  %v64_v6 = vld [vmem:[#allocation5 + $0x18] sm:$0xff]  ;;  %vm72_vm1 = vcmask 261120   ;;  %s471_s7 = smov [#allocation8]  }
  0x38   :  { %336 = vmatprep.subr.bf16.mxu1 %v468_v0  ;;  %327 = vmatprep.mubr.msk.f32.mxu1 %vm469_vm0, %v470_v1  ;;  %v331_v5 = vpack.c.bf16 %v62_v3, %v61_v2  ;;  %v149_v7 = vld [vmem:[#allocation7] sm:$0xff]  ;;  %v150_v8 = vld [vmem:[#allocation7 + $0x8] sm:$0xff]  ;;  %v151_v9 = vld [vmem:[#allocation7 + $0x10] sm:$0xff]  ;;  %v334_v11 = vpack.c.bf16 %v64_v6, %v63_v4  ;;  %s249_s8 = sshll.u32 %s471_s7, 4  ;;  %s250_s8 = int_to_ptr.vmem [resolvable:$true] %s249_s8 }
  0x39   :  { %v152_v10 = vld [vmem:[#allocation7 + $0x18] sm:$0xff]  ;;  %v337_v12 = vpack.c.bf16 %v150_v8, %v149_v7  ;;  %v153_v14 = vld [vmem:[#allocation7 + $0x20] sm:$0xff]  ;;  %v154_v15 = vld [vmem:[#allocation7 + $0x28] sm:$0xff]  ;;  %s435_s9 = scalar_lea.vmem %s250_s8, 32  ;;  %p440_p11 = scmp.lt.s32.totalorder %s250_s8, %s250_s8 }
  0x3a   :  { %332 = vmatpush3.bf16.msra.mxu0 %v331_v5  ;;  %v340_v13 = vpack.c.bf16 %v152_v10, %v151_v9  ;;  %v60_v16 = vld [vmem:[#allocation2] sm:$0x3]  ;;  %v343_v17 = vpack.c.bf16 %v154_v15, %v153_v14  ;;  %v155_v18 = vld [vmem:[#allocation7 + $0x30] sm:$0xff]  ;;  %v157_v21 = vld [vmem:[#allocation7 + $0x40] sm:$0xff]  ;;  %p436_p10 = scmp.ne.s32.totalorder %s250_s8, %s435_s9  ;;  %p441_p12 = scmp.lt.s32.totalorder %s435_s9, %s435_s9 }
  0x3b   :  { %333 = vmatprep.subr.bf16.mxu0 %v468_v0  ;;  %338 = vmatpush3.bf16.msra.mxu1 %v337_v12  ;;  %v156_v19 = vld [vmem:[#allocation7 + $0x38] sm:$0xff]  ;;  %v158_v22 = vld [vmem:[#allocation7 + $0x48] sm:$0xff]  ;;  %v159_v24 = vld [vmem:[#allocation7 + $0x50] sm:$0xff] }
  0x3c   :  { %339 = vmatprep.subr.bf16.mxu1 %v468_v0  ;;  %v346_v20 = vpack.c.bf16 %v156_v19, %v155_v18  ;;  %v349_v23 = vpack.c.bf16 %v158_v22, %v157_v21  ;;  %v160_v25 = vld [vmem:[#allocation7 + $0x58] sm:$0xff]  ;;  %v161_v27 = vld [vmem:[#allocation7 + $0x60] sm:$0xff]  ;;  %v162_v28 = vld [vmem:[#allocation7 + $0x68] sm:$0xff]  ;;  %p442_p13 = por %p441_p12, %p440_p11 }
  0x3d   :  { %v352_v26 = vpack.c.bf16 %v160_v25, %v159_v24  ;;  %v355_v29 = vpack.c.bf16 %v162_v28, %v161_v27  ;;  %v163_v30 = vld [vmem:[#allocation7 + $0x70] sm:$0xff]  ;;  %v164_v31 = vld [vmem:[#allocation7 + $0x78] sm:$0xff] }
  0x3e   :  { %335 = vmatpush3.bf16.msra.mxu0 %v334_v11  ;;  %v358_v32 = vpack.c.bf16 %v164_v31, %v163_v30  ;;  %v259_v33 = vld [vmem:[%s564_s2] ss:$0 sm:$0xff]  ;;  %p443_p0 = pnand %p442_p13, %p436_p10 }
  0x3f   :  { %341 = vmatpush3.bf16.msra.mxu1 %v340_v13  ;;  %v261_v39 = vld [vmem:[%s566_s4] ss:$0 sm:$0xff] }
  0x40   :  { %342 = vmatprep.subr.bf16.mxu1 %v468_v0 }
  0x41   :  { %293 = vmatmul.mubr.msk.f32.vlgmr.msra.gmra.mrb[0].mxu0 %vm72_vm1, %v60_v16 }
  0x43   :  { %344 = vmatpush3.bf16.msra.mxu1 %v343_v17 }
  0x44   :  { %345 = vmatprep.subr.bf16.mxu1 %v468_v0 }
  0x47   :  { %347 = vmatpush3.bf16.msra.mxu1 %v346_v20 }
  0x48   :  { %348 = vmatprep.subr.bf16.mxu1 %v468_v0 }
  0x4b   :  { %350 = vmatpush3.bf16.msra.mxu1 %v349_v23 }
  0x4c   :  { %351 = vmatprep.subr.bf16.mxu1 %v468_v0 }
  0x4f   :  { %353 = vmatpush3.bf16.msra.mxu1 %v352_v26 }
  0x50   :  { %354 = vmatprep.subr.bf16.mxu1 %v468_v0 }
  0x53   :  { %356 = vmatpush3.bf16.msra.mxu1 %v355_v29 }
  0x54   :  { %357 = vmatprep.subr.bf16.mxu1 %v468_v0 }
  0x57   :  { %359 = vmatpush3.bf16.msra.mxu1 %v358_v32 }
 0x114   :  { %v142_v34 = vpop.f32.mrb[0].mxu0 }
 0x115   :  { %v143_v35 = vadd.f32 %v259_v33, %v142_v34  ;;  %v294_v36 = vpop.f32.mrb[1].mxu0 }
 0x117   :  { %v147_v37 = vmul.f32 0.01, %v143_v35  ;;  %vm146_vm2 = vcmp.gt.f32.partialorder %v143_v35, 0.0 }
 0x119   :  { %v148_v38 = vsel %vm146_vm2, %v143_v35, %v147_v37 }
 0x11a   :  { %328 = vmatmul.mubr.f32.vlgmr.msra.gmra.mrb[0].mxu1 %v148_v38 }
 0x1ed   :  { %v238_v40 = vpop.f32.mrb[0].mxu1 }
 0x1ee   :  { %v239_v41 = vadd.f32 %v261_v39, %v238_v40  ;;  %v329_v42 = vpop.f32.mrb[1].mxu1 }
 0x1f0   :  { %242 = vst [vmem:[#allocation8] sm:$0x3] %v239_v41 }
 0x1f1   :  { %446 = shalt.err (!%p443_p0)
}
 0x1f2   :  { %s447_s11 = scalar_lea.hbm %s567_s5, 32 }
 0x1f3   :  { %p448_p1 = scmp.ne.s32.totalorder %s567_s5, %s447_s11  ;;  %p451_p2 = scmp.lt.u32.totalorder %s447_s11, %s567_s5 }
 0x1f5   :  { %p453_p3 = pnand %p451_p2, %p448_p1 }
 0x1f7   :  { %456 = shalt.err (!%p453_p3)
}
 0x1f8   :  { %252 = dma.vmem_to_hbm [thread:$0]  %s250_s8, 32, %s567_s5, [#allocation4]  }
 0x1f9   :  { %461 = dma.done.wait [#allocation4], 32  }
 0x1fa   :  { %462 = vsyncadd [#allocation4], 4294967264 }
 0x1fb   :  { %256 = vsyncpa [#allocation3], 1 }
 0x1fc   :  { %257 = vsyncpa [#allocation6], 1 }
 0x1fd   :  { %258 = vsyncpa [#allocation4], 1 }

</bundles_post_ra>
